<compile_context>
chip_gen: v6e
topology: v6e:2x2x1
jax: 0.10.0
libtpu: 0.0.40
codegen_flags: <defaults>
</compile_context>

<pallas_src>
import jax
import jax.numpy as jnp
from jax import lax
from jax.experimental import pallas as pl
from jax.experimental.pallas import tpu as pltpu

# Module hyper-parameters (defaults of MultipleNegativesRankingLossSpladePair)
SCALE = 1.0
LAMBDA_D = 0.0008
LAMBDA_Q = 0.0006   # defined in __init__ but NOT applied in forward (kept for fidelity)
PAIR_LAMBDA = 0.1
NEG_FILL = -100.0


def _round_up(x, m):
    return ((x + m - 1) // m) * m


def _cdiv(a, b):
    return (a + b - 1) // b


def _choose_config(D, B, N, itemsize, tile_d=None, n_split=None):
    """Pick (n_chunks, tiles_per_chunk, tile_d, padded_D, vmem_limit_bytes)."""
    kind = ""
    try:
        kind = jax.devices()[0].device_kind.lower()
    except Exception:
        pass
    if "v5" in kind:            # v5e: 128 MiB VMEM
        td_max, vmem_cap = 8192, 96 << 20
    elif "v6" in kind:          # v6e: 128 MiB VMEM -> big tiles, fewer grid steps
        td_max, vmem_cap = 16384, 100 << 20
    else:                       # v7x (64 MiB physical VMEM) / unknown: conservative
        td_max, vmem_cap = 8192, 44 << 20

    if n_split is None:
        n_split = 2 if "v7" in kind else 1    # v7x has 2 TensorCores per chip
    n_split = max(1, int(n_split))

    sub = 8 * max(1, 4 // itemsize)           # sublane multiple for the input dtype

    def footprint(td_):
        # Double-buffered, lane-dense natural-layout input tiles: (B, td) + (N, td).
        rows = _round_up(B, sub) + _round_up(N, sub)
        inputs = 2 * itemsize * td_ * rows
        # Resident f32 output accumulators (sublane padded to 8, lanes to 128).
        accs = 4 * (_round_up(B, 8) * (_round_up(N, 128) + _round_up(B, 128))
                    + 2 * 8 * 128)
        return inputs + accs

    if tile_d is not None:
        td = max(128, _round_up(int(tile_d), 128))
    else:
        # Padding-aware: choose the tile so D is only padded to the next
        # 128 multiple per tile (no near-empty last tile).
        n_tiles = max(n_split, _cdiv(D, td_max))
        n_tiles = _round_up(n_tiles, n_split)
        td = _round_up(_cdiv(D, n_tiles), 128)

    while td > 128 and footprint(td) + (8 << 20) > vmem_cap:
        td = max(128, _round_up(td // 2, 128))

    kpc = _cdiv(_cdiv(D, td), n_split)        # D tiles per parallel chunk
    d_pad = n_split * kpc * td
    vmem_limit = int(min(vmem_cap, max(32 << 20, footprint(td) + (8 << 20))))
    return n_split, kpc, td, d_pad, vmem_limit


def _mnr_splade_pair_kernel(a_ref, b_ref, q_ref, pp_ref, fq_ref, fd_ref):
    """One D tile: accumulate q = a@b^T, pp = p@p^T and the FLOPS partial sums."""
    k = pl.program_id(1)          # D-tile index inside this chunk (reduction axis)

    @pl.when(k == 0)
    def _init():
        q_ref[...] = jnp.zeros_like(q_ref)
        pp_ref[...] = jnp.zeros_like(pp_ref)
        fq_ref[...] = jnp.zeros_like(fq_ref)
        fd_ref[...] = jnp.zeros_like(fd_ref)

    a = a_ref[...]                # (B, TD) anchors, natural lane-dense layout
    b = b_ref[...]                # (N, TD) = cat([positives, hard negatives])
    Bq = a.shape[0]
    p = b[:Bq, :]                 # positives are the first B rows of emb_b

    # A @ B^T on the MXU: contract the LAST dim of both operands -- no HBM
    # pre-transpose and no per-tile layout copies (any fixup rides the idle XLU).
    dn = (((1,), (1,)), ((), ()))
    q_ref[...] += lax.dot_general(a, b, dn, preferred_element_type=jnp.float32)
    pp_ref[...] += lax.dot_general(p, p, dn, preferred_element_type=jnp.float32)

    # FLOPS regularizer partial sums: mean over the (fully resident) batch axis,
    # square + sum over this D slice.  Zero D-padding contributes exactly 0.
    abs_a = jnp.abs(a.astype(jnp.float32))                           # (B, TD)
    mean_a = jnp.sum(abs_a, axis=0, keepdims=True) * (1.0 / Bq)      # (1, TD)
    fq_ref[...] += jnp.sum(mean_a * mean_a, axis=1, keepdims=True)   # (1, 1)

    abs_b = jnp.abs(b.astype(jnp.float32))                           # (N, TD)
    mean_b = jnp.sum(abs_b, axis=0, keepdims=True) * (1.0 / b.shape[0])
    fd_ref[...] += jnp.sum(mean_b * mean_b, axis=1, keepdims=True)   # (1, 1)


def mnr_splade_pair_loss(embeddings_a, embeddings_b, *, tile_d=None,
                         n_split=None, use_bf16=False):
    """SPLADE pair MNR loss (forward of MultipleNegativesRankingLossSpladePair).

    embeddings_a: (B, D) anchors (reps[0]);
    embeddings_b: (N, D) = cat([positive_passages, hard negatives]) (reps[1:]),
    positives first -- exactly what torch.cat(reps[1:]) produces, so
    embeddings_b[:B] IS reps[1] and a@p^T = q[:, :B].
    Returns a scalar f32 loss.
    """
    B, D = embeddings_a.shape
    N, Db = embeddings_b.shape
    assert Db == D and N >= B, "embeddings_b must be cat([positives, negatives])"

    if use_bf16:
        # Halves HBM bytes for this bandwidth-bound kernel; MXU still accumulates f32.
        embeddings_a = embeddings_a.astype(jnp.bfloat16)
        embeddings_b = embeddings_b.astype(jnp.bfloat16)
    itemsize = jnp.dtype(embeddings_a.dtype).itemsize

    C, kpc, td, d_pad, vmem_limit = _choose_config(D, B, N, itemsize, tile_d, n_split)
    if d_pad != D:
        # Zero padding along D is exact: it contributes 0 to every dot product
        # and 0 to the |.|-mean^2 FLOPS terms.
        pad = ((0, 0), (0, d_pad - D))
        embeddings_a = jnp.pad(embeddings_a, pad)
        embeddings_b = jnp.pad(embeddings_b, pad)

    def d_map(c, k, kpc=kpc):           # chunk c handles D tiles [c*kpc, (c+1)*kpc)
        return (0, c * kpc + k)

    q_parts, pp_parts, fq_parts, fd_parts = pl.pallas_call(
        _mnr_splade_pair_kernel,
        out_shape=(
            jax.ShapeDtypeStruct((C, B, N), jnp.float32),   # per-chunk a @ b^T
            jax.ShapeDtypeStruct((C, B, B), jnp.float32),   # per-chunk p @ p^T
            jax.ShapeDtypeStruct((C, 1, 1), jnp.float32),   # per-chunk FLOPS(query)
            jax.ShapeDtypeStruct((C, 1, 1), jnp.float32),   # per-chunk FLOPS(doc)
        ),
        grid_spec=pltpu.PrefetchScalarGridSpec(
            num_scalar_prefetch=0,
            grid=(C, kpc),
            in_specs=[
                pl.BlockSpec((B, td), d_map),   # anchors tile (lane-dense)
                pl.BlockSpec((N, td), d_map),   # cat(pos, neg) tile (lane-dense)
            ],
            out_specs=(
                pl.BlockSpec((None, B, N), lambda c, k: (c, 0, 0)),
                pl.BlockSpec((None, B, B), lambda c, k: (c, 0, 0)),
                pl.BlockSpec((None, 1, 1), lambda c, k: (c, 0, 0)),
                pl.BlockSpec((None, 1, 1), lambda c, k: (c, 0, 0)),
            ),
        ),
        compiler_params=pltpu.CompilerParams(
            # D chunks shard across TensorCores (v7x); the in-chunk D axis is a
            # reduction into the resident output blocks.
            dimension_semantics=("parallel", "arbitrary"),
            vmem_limit_bytes=vmem_limit,
        ),
        # TODO(synk): if profiling shows exposed DMA gaps on the dominant b
        # stream, add pipeline_mode=pl.Buffered(3) on its BlockSpec.
    )(embeddings_a, embeddings_b)

    # ---- tiny O(B*N) epilogue in plain JAX (combines per-core partials) ----
    q = jnp.sum(q_parts, axis=0)                 # (B, N)   a @ b^T
    pp = jnp.sum(pp_parts, axis=0)               # (B, B)   p @ p^T
    flops_query = jnp.sum(fq_parts)              # reference forward omits lambda_q
    flops_doc = LAMBDA_D * jnp.sum(fd_parts)
    if SCALE != 1.0:                             # static fold (default scale == 1)
        q = q * SCALE
        pp = pp * SCALE

    ap = q[:, :B]                                # a @ positives^T == q[:, :B]
    idx = jnp.arange(B)
    # CrossEntropy(query_scores, labels=arange(B))
    ce_query = jnp.mean(jax.nn.logsumexp(q, axis=1) - q[idx, idx])
    # pair logits = cat([masked_fill(ap, ~eye, -100), masked_fill(pp, eye, -100)], 1)
    eye = jnp.eye(B, dtype=bool)
    pqs = jnp.where(eye, ap, NEG_FILL)
    pps = jnp.where(eye, NEG_FILL, pp)
    logits = jnp.concatenate([pqs, pps], axis=1)
    ce_pair = jnp.mean(jax.nn.logsumexp(logits, axis=1) - logits[idx, idx])

    return ((1.0 - PAIR_LAMBDA) * ce_query + PAIR_LAMBDA * ce_pair
            + flops_doc + flops_query)


mnr_splade_pair_loss_jit = jax.jit(
    mnr_splade_pair_loss, static_argnames=("tile_d", "n_split", "use_bf16"))


def reference_loss(emb_a, emb_p, emb_b):
    """Pure-JAX reference mirroring the PyTorch forward (high-precision matmuls)."""
    hp = lax.Precision.HIGHEST
    B = emb_a.shape[0]
    idx = jnp.arange(B)
    q_scores = jnp.dot(emb_a, emb_b.T, precision=hp) * SCALE
    ce_q = jnp.mean(jax.nn.logsumexp(q_scores, axis=1) - q_scores[idx, idx])
    eye = jnp.eye(B, dtype=bool)
    pqs = jnp.where(eye, jnp.dot(emb_a, emb_p.T, precision=hp) * SCALE, NEG_FILL)
    pps = jnp.where(eye, NEG_FILL, jnp.dot(emb_p, emb_p.T, precision=hp) * SCALE)
    logits = jnp.concatenate([pqs, pps], axis=1)
    ce_p = jnp.mean(jax.nn.logsumexp(logits, axis=1) - logits[idx, idx])
    flops_doc = LAMBDA_D * jnp.sum(jnp.mean(jnp.abs(emb_b), axis=0) ** 2)
    flops_q = jnp.sum(jnp.mean(jnp.abs(emb_a), axis=0) ** 2)
    return ((1.0 - PAIR_LAMBDA) * ce_q + PAIR_LAMBDA * ce_p
            + flops_doc + flops_q)


if __name__ == "__main__":
    B, D = 8, 512          # batch of anchor/positive pairs, embedding (vocab) dim
    key = jax.random.PRNGKey(0)
    ka, kp, kn = jax.random.split(key, 3)

    # SPLADE-style (non-negative, sparse-ish) deterministic synthetic embeddings.
    def splade_like(k, shape):
        x = jax.random.normal(k, shape, dtype=jnp.float32)
        return jnp.log1p(jax.nn.relu(x))       # log(1 + relu(x))

    emb_a = splade_like(ka, (B, D))            # reps[0]: anchors / queries
    emb_p = splade_like(kp, (B, D))            # reps[1]: positive passages
    emb_n = splade_like(kn, (B, D))            # reps[2]: one hard negative per pair
    emb_b = jnp.concatenate([emb_p, emb_n], axis=0)   # torch.cat(reps[1:]) -> (2B, D)

    ref = jax.block_until_ready(reference_loss(emb_a, emb_p, emb_b))

    # 1) device-auto config (single D tile at this small D on v5e/v6e).
    out = jax.block_until_ready(mnr_splade_pair_loss_jit(emb_a, emb_b))
    assert jnp.allclose(out, ref, rtol=2e-3, atol=2e-2), (float(out), float(ref))

    # 2) force a real D pipeline: 4 tiles of 128 on one chunk (accumulator path).
    out = jax.block_until_ready(mnr_splade_pair_loss_jit(emb_a, emb_b, tile_d=128))
    assert jnp.allclose(out, ref, rtol=2e-3, atol=2e-2), (float(out), float(ref))

    # 3) force the dual-TensorCore split: 2 "parallel" D chunks x 2 tiles each.
    out = jax.block_until_ready(
        mnr_splade_pair_loss_jit(emb_a, emb_b, tile_d=128, n_split=2))
    assert jnp.allclose(out, ref, rtol=2e-3, atol=2e-2), (float(out), float(ref))

    # 4) D not a multiple of the tile -> zero-padding path.
    ref_odd = jax.block_until_ready(
        reference_loss(emb_a[:, :300], emb_p[:, :300], emb_b[:, :300]))
    out = jax.block_until_ready(
        mnr_splade_pair_loss_jit(emb_a[:, :300], emb_b[:, :300],
                                 tile_d=128, n_split=2))
    assert jnp.allclose(out, ref_odd, rtol=2e-3, atol=2e-2), (float(out), float(ref_odd))

    # 5) bf16 streaming (halves HBM bytes); looser tolerance vs. the f32 reference.
    out = jax.block_until_ready(
        mnr_splade_pair_loss_jit(emb_a, emb_b, tile_d=128, use_bf16=True))
    assert jnp.allclose(out, ref, rtol=1e-2, atol=2e-1), (float(out), float(ref))

    print("KERNEL_OK")
</pallas_src>

<mosaic_0001>
module attributes {stable_mosaic.version = 11 : i64} {
  func.func @_mnr_splade_pair_kernel(%arg0: i32, %arg1: i32, %arg2: memref<8x512xf32, #tpu.memory_space<vmem>>, %arg3: memref<16x512xf32, #tpu.memory_space<vmem>>, %arg4: memref<1x8x16xf32, #tpu.memory_space<vmem>>, %arg5: memref<1x8x8xf32, #tpu.memory_space<vmem>>, %arg6: memref<1x1x1xf32, #tpu.memory_space<vmem>>, %arg7: memref<1x1x1xf32, #tpu.memory_space<vmem>>) attributes {dimension_semantics = [#tpu.dimension_semantics<parallel>, #tpu.dimension_semantics<arbitrary>], iteration_bounds = array<i64: 1, 1>, scalar_prefetch = 0 : i64, scratch_operands = 0 : i64, tpu.core_type = #tpu.core_type<tc>, window_params = [{transform_indices = @transform_0, window_bounds = array<i64: 8, 512>}, {transform_indices = @transform_1, window_bounds = array<i64: 16, 512>}, {transform_indices = @transform_2, window_bounds = array<i64: 1, 8, 16>}, {transform_indices = @transform_3, window_bounds = array<i64: 1, 8, 8>}, {transform_indices = @transform_4, window_bounds = array<i64: 1, 1, 1>}, {transform_indices = @transform_5, window_bounds = array<i64: 1, 1, 1>}]} {
    %c0_i32 = arith.constant 0 : i32
    %0 = arith.cmpi eq, %arg1, %c0_i32 : i32
    %1 = arith.extui %0 : i1 to i32
    %c0_i32_0 = arith.constant 0 : i32
    %2 = arith.cmpi ne, %1, %c0_i32_0 : i32
    scf.if %2 {
      %cst_35 = arith.constant 0.000000e+00 : f32
      %48 = vector.broadcast %cst_35 : f32 to vector<8x16xf32>
      %c0_36 = arith.constant 0 : index
      %c0_37 = arith.constant 0 : index
      %c0_38 = arith.constant 0 : index
      %49 = vector.load %arg4[%c0_36, %c0_37, %c0_38] : memref<1x8x16xf32, #tpu.memory_space<vmem>>, vector<1x8x16xf32>
      %50 = vector.shape_cast %49 : vector<1x8x16xf32> to vector<8x16xf32>
      %51 = vector.shape_cast %48 : vector<8x16xf32> to vector<1x8x16xf32>
      tpu.vector_store %arg4[%c0_36, %c0_37, %c0_38], %51 {strides = array<i32>} : memref<1x8x16xf32, #tpu.memory_space<vmem>>, vector<1x8x16xf32>,
      %cst_39 = arith.constant 0.000000e+00 : f32
      %52 = vector.broadcast %cst_39 : f32 to vector<8x8xf32>
      %c0_40 = arith.constant 0 : index
      %c0_41 = arith.constant 0 : index
      %c0_42 = arith.constant 0 : index
      %53 = vector.load %arg5[%c0_40, %c0_41, %c0_42] : memref<1x8x8xf32, #tpu.memory_space<vmem>>, vector<1x8x8xf32>
      %54 = vector.shape_cast %53 : vector<1x8x8xf32> to vector<8x8xf32>
      %55 = vector.shape_cast %52 : vector<8x8xf32> to vector<1x8x8xf32>
      tpu.vector_store %arg5[%c0_40, %c0_41, %c0_42], %55 {strides = array<i32>} : memref<1x8x8xf32, #tpu.memory_space<vmem>>, vector<1x8x8xf32>,
      %cst_43 = arith.constant 0.000000e+00 : f32
      %56 = vector.broadcast %cst_43 : f32 to vector<1x1xf32>
      %c0_44 = arith.constant 0 : index
      %c0_45 = arith.constant 0 : index
      %c0_46 = arith.constant 0 : index
      %57 = vector.load %arg6[%c0_44, %c0_45, %c0_46] : memref<1x1x1xf32, #tpu.memory_space<vmem>>, vector<1x1x1xf32>
      %58 = vector.shape_cast %57 : vector<1x1x1xf32> to vector<1x1xf32>
      %59 = vector.shape_cast %56 : vector<1x1xf32> to vector<1x1x1xf32>
      tpu.vector_store %arg6[%c0_44, %c0_45, %c0_46], %59 {strides = array<i32>} : memref<1x1x1xf32, #tpu.memory_space<vmem>>, vector<1x1x1xf32>,
      %cst_47 = arith.constant 0.000000e+00 : f32
      %60 = vector.broadcast %cst_47 : f32 to vector<1x1xf32>
      %c0_48 = arith.constant 0 : index
      %c0_49 = arith.constant 0 : index
      %c0_50 = arith.constant 0 : index
      %61 = vector.load %arg7[%c0_48, %c0_49, %c0_50] : memref<1x1x1xf32, #tpu.memory_space<vmem>>, vector<1x1x1xf32>
      %62 = vector.shape_cast %61 : vector<1x1x1xf32> to vector<1x1xf32>
      %63 = vector.shape_cast %60 : vector<1x1xf32> to vector<1x1x1xf32>
      tpu.vector_store %arg7[%c0_48, %c0_49, %c0_50], %63 {strides = array<i32>} : memref<1x1x1xf32, #tpu.memory_space<vmem>>, vector<1x1x1xf32>,
    } else {
    }
    %c0 = arith.constant 0 : index
    %c0_1 = arith.constant 0 : index
    %3 = vector.load %arg2[%c0, %c0_1] : memref<8x512xf32, #tpu.memory_space<vmem>>, vector<8x512xf32>
    %c0_2 = arith.constant 0 : index
    %c0_3 = arith.constant 0 : index
    %4 = vector.load %arg3[%c0_2, %c0_3] : memref<16x512xf32, #tpu.memory_space<vmem>>, vector<16x512xf32>
    %5 = vector.extract_strided_slice %4 {offsets = [0, 0], sizes = [8, 512], strides = [1, 1]} : vector<16x512xf32> to vector<8x512xf32>
    %c0_4 = arith.constant 0 : index
    %c0_5 = arith.constant 0 : index
    %c0_6 = arith.constant 0 : index
    %6 = vector.load %arg4[%c0_4, %c0_5, %c0_6] : memref<1x8x16xf32, #tpu.memory_space<vmem>>, vector<1x8x16xf32>
    %7 = vector.shape_cast %6 : vector<1x8x16xf32> to vector<8x16xf32>
    %cst = arith.constant dense<0.000000e+00> : vector<8x16xf32>
    %8 = tpu.matmul %3, %4, %cst {dimension_numbers = #tpu.dot_dimension_numbers<[1], [1], [0], [0], [0, 0, 1, 0], [], []>} : vector<8x512xf32>, vector<16x512xf32>, vector<8x16xf32> -> vector<8x16xf32>
    %9 = arith.addf %7, %8 : vector<8x16xf32>
    %c0_7 = arith.constant 0 : index
    %c0_8 = arith.constant 0 : index
    %c0_9 = arith.constant 0 : index
    %10 = vector.load %arg4[%c0_7, %c0_8, %c0_9] : memref<1x8x16xf32, #tpu.memory_space<vmem>>, vector<1x8x16xf32>
    %11 = vector.shape_cast %10 : vector<1x8x16xf32> to vector<8x16xf32>
    %12 = vector.shape_cast %9 : vector<8x16xf32> to vector<1x8x16xf32>
    tpu.vector_store %arg4[%c0_7, %c0_8, %c0_9], %12 {strides = array<i32>} : memref<1x8x16xf32, #tpu.memory_space<vmem>>, vector<1x8x16xf32>,
    %c0_10 = arith.constant 0 : index
    %c0_11 = arith.constant 0 : index
    %c0_12 = arith.constant 0 : index
    %13 = vector.load %arg5[%c0_10, %c0_11, %c0_12] : memref<1x8x8xf32, #tpu.memory_space<vmem>>, vector<1x8x8xf32>
    %14 = vector.shape_cast %13 : vector<1x8x8xf32> to vector<8x8xf32>
    %cst_13 = arith.constant dense<0.000000e+00> : vector<8x8xf32>
    %15 = tpu.matmul %5, %5, %cst_13 {dimension_numbers = #tpu.dot_dimension_numbers<[1], [1], [0], [0], [0, 0, 1, 0], [], []>} : vector<8x512xf32>, vector<8x512xf32>, vector<8x8xf32> -> vector<8x8xf32>
    %16 = arith.addf %14, %15 : vector<8x8xf32>
    %c0_14 = arith.constant 0 : index
    %c0_15 = arith.constant 0 : index
    %c0_16 = arith.constant 0 : index
    %17 = vector.load %arg5[%c0_14, %c0_15, %c0_16] : memref<1x8x8xf32, #tpu.memory_space<vmem>>, vector<1x8x8xf32>
    %18 = vector.shape_cast %17 : vector<1x8x8xf32> to vector<8x8xf32>
    %19 = vector.shape_cast %16 : vector<8x8xf32> to vector<1x8x8xf32>
    tpu.vector_store %arg5[%c0_14, %c0_15, %c0_16], %19 {strides = array<i32>} : memref<1x8x8xf32, #tpu.memory_space<vmem>>, vector<1x8x8xf32>,
    %20 = math.absf %3 : vector<8x512xf32>
    %cst_17 = arith.constant dense<0.000000e+00> : vector<512xf32>
    %21 = vector.multi_reduction <add>, %20, %cst_17 [0] : vector<8x512xf32> to vector<512xf32>
    %22 = vector.shape_cast %21 : vector<512xf32> to vector<1x512xf32>
    %cst_18 = arith.constant 1.250000e-01 : f32
    %23 = vector.broadcast %cst_18 : f32 to vector<1x512xf32>
    %24 = arith.mulf %22, %23 : vector<1x512xf32>
    %c0_19 = arith.constant 0 : index
    %c0_20 = arith.constant 0 : index
    %c0_21 = arith.constant 0 : index
    %25 = vector.load %arg6[%c0_19, %c0_20, %c0_21] : memref<1x1x1xf32, #tpu.memory_space<vmem>>, vector<1x1x1xf32>
    %26 = vector.shape_cast %25 : vector<1x1x1xf32> to vector<1x1xf32>
    %27 = arith.mulf %24, %24 : vector<1x512xf32>
    %cst_22 = arith.constant dense<0.000000e+00> : vector<1xf32>
    %28 = vector.multi_reduction <add>, %27, %cst_22 [1] : vector<1x512xf32> to vector<1xf32>
    %29 = vector.shape_cast %28 : vector<1xf32> to vector<1x1xf32>
    %30 = arith.addf %26, %29 : vector<1x1xf32>
    %c0_23 = arith.constant 0 : index
    %c0_24 = arith.constant 0 : index
    %c0_25 = arith.constant 0 : index
    %31 = vector.load %arg6[%c0_23, %c0_24, %c0_25] : memref<1x1x1xf32, #tpu.memory_space<vmem>>, vector<1x1x1xf32>
    %32 = vector.shape_cast %31 : vector<1x1x1xf32> to vector<1x1xf32>
    %33 = vector.shape_cast %30 : vector<1x1xf32> to vector<1x1x1xf32>
    tpu.vector_store %arg6[%c0_23, %c0_24, %c0_25], %33 {strides = array<i32>} : memref<1x1x1xf32, #tpu.memory_space<vmem>>, vector<1x1x1xf32>,
    %34 = math.absf %4 : vector<16x512xf32>
    %cst_26 = arith.constant dense<0.000000e+00> : vector<512xf32>
    %35 = vector.multi_reduction <add>, %34, %cst_26 [0] : vector<16x512xf32> to vector<512xf32>
    %36 = vector.shape_cast %35 : vector<512xf32> to vector<1x512xf32>
    %cst_27 = arith.constant 6.250000e-02 : f32
    %37 = vector.broadcast %cst_27 : f32 to vector<1x512xf32>
    %38 = arith.mulf %36, %37 : vector<1x512xf32>
    %c0_28 = arith.constant 0 : index
    %c0_29 = arith.constant 0 : index
    %c0_30 = arith.constant 0 : index
    %39 = vector.load %arg7[%c0_28, %c0_29, %c0_30] : memref<1x1x1xf32, #tpu.memory_space<vmem>>, vector<1x1x1xf32>
    %40 = vector.shape_cast %39 : vector<1x1x1xf32> to vector<1x1xf32>
    %41 = arith.mulf %38, %38 : vector<1x512xf32>
    %cst_31 = arith.constant dense<0.000000e+00> : vector<1xf32>
    %42 = vector.multi_reduction <add>, %41, %cst_31 [1] : vector<1x512xf32> to vector<1xf32>
    %43 = vector.shape_cast %42 : vector<1xf32> to vector<1x1xf32>
    %44 = arith.addf %40, %43 : vector<1x1xf32>
    %c0_32 = arith.constant 0 : index
    %c0_33 = arith.constant 0 : index
    %c0_34 = arith.constant 0 : index
    %45 = vector.load %arg7[%c0_32, %c0_33, %c0_34] : memref<1x1x1xf32, #tpu.memory_space<vmem>>, vector<1x1x1xf32>
    %46 = vector.shape_cast %45 : vector<1x1x1xf32> to vector<1x1xf32>
    %47 = vector.shape_cast %44 : vector<1x1xf32> to vector<1x1x1xf32>
    tpu.vector_store %arg7[%c0_32, %c0_33, %c0_34], %47 {strides = array<i32>} : memref<1x1x1xf32, #tpu.memory_space<vmem>>, vector<1x1x1xf32>,
    return
  }
  func.func @transform_0(%arg0: i32, %arg1: i32) -> (i32, i32) {
    %c1_i32 = arith.constant 1 : i32
    %0 = arith.muli %arg0, %c1_i32 : i32
    %1 = arith.addi %0, %arg1 : i32
    %c0_i32 = arith.constant 0 : i32
    %c0_i32_0 = arith.constant 0 : i32
    return %c0_i32, %1 : i32, i32
  }
  func.func @transform_1(%arg0: i32, %arg1: i32) -> (i32, i32) {
    %c1_i32 = arith.constant 1 : i32
    %0 = arith.muli %arg0, %c1_i32 : i32
    %1 = arith.addi %0, %arg1 : i32
    %c0_i32 = arith.constant 0 : i32
    %c0_i32_0 = arith.constant 0 : i32
    return %c0_i32, %1 : i32, i32
  }
  func.func @transform_2(%arg0: i32, %arg1: i32) -> (i32, i32, i32) {
    %c0_i32 = arith.constant 0 : i32
    %c0_i32_0 = arith.constant 0 : i32
    %c0_i32_1 = arith.constant 0 : i32
    return %arg0, %c0_i32, %c0_i32_0 : i32, i32, i32
  }
  func.func @transform_3(%arg0: i32, %arg1: i32) -> (i32, i32, i32) {
    %c0_i32 = arith.constant 0 : i32
    %c0_i32_0 = arith.constant 0 : i32
    %c0_i32_1 = arith.constant 0 : i32
    return %arg0, %c0_i32, %c0_i32_0 : i32, i32, i32
  }
  func.func @transform_4(%arg0: i32, %arg1: i32) -> (i32, i32, i32) {
    %c0_i32 = arith.constant 0 : i32
    %c0_i32_0 = arith.constant 0 : i32
    %c0_i32_1 = arith.constant 0 : i32
    return %arg0, %c0_i32, %c0_i32_0 : i32, i32, i32
  }
  func.func @transform_5(%arg0: i32, %arg1: i32) -> (i32, i32, i32) {
    %c0_i32 = arith.constant 0 : i32
    %c0_i32_0 = arith.constant 0 : i32
    %c0_i32_1 = arith.constant 0 : i32
    return %arg0, %c0_i32, %c0_i32_0 : i32, i32, i32
  }
}

</mosaic_0001>

<bundles_post_ra>
// kernel: mnr_splade_pair_loss.1
= control target key start
LH: loop header
LB: loop body
LE: loop exit
PB: predicated region body
PF: predicated region fallthrough
CT: control target
= control target key end

     0   :  { %11 = vsyncpa [#allocation3], 0  ;;  %s695_s0 = inlined_call_operand.hbm [shape: f32[8,512], index: 0, kind: input, shape index: {}]   ;;  %s696_s1 = inlined_call_operand.hbm [shape: f32[16,512], index: 1, kind: input, shape index: {}]   ;;  %s697_s2 = inlined_call_operand.vmem [shape: f32[1,8,16], index: 2, kind: output, shape index: {0}]   ;;  %s698_s3 = inlined_call_operand.vmem [shape: f32[1,8,8], index: 3, kind: output, shape index: {1}]   ;;  %s699_s4 = inlined_call_operand.hbm [shape: f32[1,1,1], index: 4, kind: output, shape index: {2}]   ;;  %s700_s5 = inlined_call_operand.hbm [shape: f32[1,1,1], index: 5, kind: output, shape index: {3}]  }
   0x1   :  { %12 = vsyncpa [#allocation6], 0 }
   0x2   :  { %13 = vsyncpa [#allocation4], 0 }
   0x3   :  { %14 = vsyncpa [#allocation9], 0  ;;  %s596_s18 = smov [#allocation2]   ;;  %s597_s20 = smov [#allocation5]  }
   0x4   :  { %s25_s19 = sshll.u32 %s596_s18, 4  ;;  %s38_s21 = sshll.u32 %s597_s20, 4  ;;  %s26_s19 = int_to_ptr.vmem [resolvable:$true] %s25_s19  ;;  %s39_s21 = int_to_ptr.vmem [resolvable:$true] %s38_s21 }
   0x5   :  { %s516_s22 = scalar_lea.vmem %s26_s19, 512  ;;  %p521_p1 = scmp.lt.s32.totalorder %s26_s19, %s26_s19 }
   0x6   :  { %p517_p0 = scmp.ne.s32.totalorder %s26_s19, %s516_s22  ;;  %p522_p2 = scmp.lt.s32.totalorder %s516_s22, %s516_s22 }
   0x8   :  { %p523_p3 = por %p522_p2, %p521_p1 }
   0xa   :  { %p524_p4 = pnand %p523_p3, %p517_p0 }
   0xc   :  { %527 = shalt.err (!%p524_p4)
}
   0xd   :  { %28 = dma.hbm_to_vmem [thread:$0]  %s695_s0, 512, %s26_s19, [#allocation3]  }
   0xe   :  { %s536_s25 = scalar_lea.vmem %s39_s21, 1024  ;;  %p541_p6 = scmp.lt.s32.totalorder %s39_s21, %s39_s21 }
   0xf   :  { %p537_p5 = scmp.ne.s32.totalorder %s39_s21, %s536_s25  ;;  %p542_p7 = scmp.lt.s32.totalorder %s536_s25, %s536_s25 }
  0x11   :  { %p543_p8 = por %p542_p7, %p541_p6 }
  0x13   :  { %p544_p9 = pnand %p543_p8, %p537_p5 }
  0x15   :  { %547 = shalt.err (!%p544_p9)
}
  0x16   :  { %s598_s26 = smov 512   ;;  %s599_s27 = smov 32  }
  0x17   :  { %44 = dma.hbm_to_vmem [thread:$0]  %s696_s1, 1024, %s39_s21, [#allocation6], %s598_s26, %s598_s26, %s599_s27  }
  0x18   :  { %588 = dma.done.wait [#allocation3], 512  }
  0x19   :  { %589 = vsyncadd [#allocation3], 4294966784 }
  0x1a   :  { %590 = dma.done.wait [#allocation6], 1024  }
  0x1b   :  { %591 = vsyncadd [#allocation6], 4294966272  ;;  %v639_v0 = vld [vmem:[#allocation5 + $0x8] sm:$0xff]  ;;  %v641_v2 = vld [vmem:[#allocation5 + $0x18] sm:$0xff]  ;;  %vm63_vm0 = vcmask 0   ;;  %vm59_vm1 = vcmask 130048  }
  0x1c   :  { %v75_v1 = vld [vmem:[#allocation5 + $0x28] sm:$0xff]  ;;  %v412_v3 = vand.u32 2147483647, %v639_v0  ;;  %v77_v5 = vld [vmem:[#allocation5 + $0x38] sm:$0xff]  ;;  %v644_v6 = vld [vmem:[#allocation5] sm:$0xff]  ;;  %vm61_vm2 = vcmask 64512  }
  0x1d   :  { %107 = vmatprep.subr.mxu0 %v75_v1  ;;  %v416_v4 = vand.u32 2147483647, %v75_v1  ;;  %177 = vmatprep.subr.mxu1 %v77_v5  ;;  %v414_v7 = vand.u32 2147483647, %v641_v2  ;;  %v418_v8 = vand.u32 2147483647, %v77_v5 }
  0x1e   :  { %v74_v9 = vld [vmem:[#allocation5 + $0x20] sm:$0xff]  ;;  %v647_v10 = vld [vmem:[#allocation5 + $0x10] sm:$0xff]  ;;  %v411_v12 = vand.u32 2147483647, %v644_v6  ;;  %v67_v15 = vld [vmem:[#allocation2 + $0x8] sm:$0xff]  ;;  %s601_s7 = smov [#allocation7]  }
  0x1f   :  { %v426_v11 = vadd.f32 %v416_v4, %v412_v3  ;;  %108 = vmatpush1.xpose.msra.mxu0 %v74_v9  ;;  %v415_v13 = vand.u32 2147483647, %v74_v9  ;;  %v76_v14 = vld [vmem:[#allocation5 + $0x30] sm:$0xff]  ;;  %v440_v16 = vadd.f32 %v418_v8, %v414_v7  ;;  %v413_v17 = vand.u32 2147483647, %v647_v10  ;;  %143 = vmatprep.mubr.f32.mxu0 %v67_v15  ;;  %v69_v22 = vld [vmem:[#allocation2 + $0x18] sm:$0xff] }
  0x20   :  { %178 = vmatpush1.xpose.msra.mxu1 %v76_v14  ;;  %v417_v18 = vand.u32 2147483647, %v76_v14  ;;  %109 = vmatprep.subr.mxu0 %v639_v0  ;;  %v367_v19 = vand.u32 2147483647, %v67_v15  ;;  %v369_v26 = vand.u32 2147483647, %v69_v22 }
  0x21   :  { %v427_v20 = vrot.slane %v426_v11, 4  ;;  %v419_v21 = vadd.f32 %v415_v13, %v411_v12  ;;  %179 = vmatprep.subr.mxu1 %v641_v2  ;;  %v441_v23 = vrot.slane %v440_v16, 4  ;;  %213 = vmatprep.mubr.f32.mxu1 %v69_v22  ;;  %v66_v27 = vld [vmem:[#allocation2] sm:$0xff]  ;;  %v68_v28 = vld [vmem:[#allocation2 + $0x10] sm:$0xff]  ;;  %s473_s8 = sshll.u32 %s601_s7, 4  ;;  %s602_s9 = smov [#allocation8]   ;;  %s474_s8 = int_to_ptr.vmem [resolvable:$true] %s473_s8 }
  0x22   :  { %v433_v24 = vadd.f32 %v417_v18, %v413_v17  ;;  %v376_v25 = vrot.slane %v367_v19, 4  ;;  %v366_v31 = vand.u32 2147483647, %v66_v27  ;;  %v368_v32 = vand.u32 2147483647, %v68_v28  ;;  %s483_s10 = sshll.u32 %s602_s9, 4  ;;  %p553_p11 = scmp.lt.s32.totalorder %s474_s8, %s474_s8  ;;  %s484_s10 = int_to_ptr.vmem [resolvable:$true] %s483_s10 }
  0x23   :  { %v428_v29 = vadd.f32 %v427_v20, %v426_v11  ;;  %v420_v30 = vrot.slane %v419_v21, 4  ;;  %110 = vmatpush1.xpose.msra.mxu0 %v644_v6  ;;  %v442_v33 = vadd.f32 %v441_v23, %v440_v16  ;;  %v388_v36 = vrot.slane %v369_v26, 4  ;;  %s548_s11 = scalar_lea.vmem %s474_s8, 16  ;;  %s552_s12 = scalar_lea.vmem %s474_s8, 32 }
  0x24   :  { %v434_v34 = vrot.slane %v433_v24, 4  ;;  %180 = vmatpush1.xpose.msra.mxu1 %v647_v10  ;;  %v377_v35 = vadd.f32 %v376_v25, %v367_v19  ;;  %253 = vmatprep.subr.mxu0 %v639_v0  ;;  %v370_v39 = vrot.slane %v366_v31, 4  ;;  %v382_v40 = vrot.slane %v368_v32, 4  ;;  %p549_p10 = scmp.ne.s32.totalorder %s474_s8, %s548_s11  ;;  %p554_p12 = scmp.lt.s32.totalorder %s552_s12, %s548_s11 }
  0x25   :  { %v429_v37 = vrot.slane %v428_v29, 2  ;;  %v421_v38 = vadd.f32 %v420_v30, %v419_v21  ;;  %323 = vmatprep.subr.mxu1 %v641_v2  ;;  %v443_v41 = vrot.slane %v442_v33, 2  ;;  %v389_v44 = vadd.f32 %v388_v36, %v369_v26 }
  0x26   :  { %v435_v42 = vadd.f32 %v434_v34, %v433_v24  ;;  %v378_v43 = vrot.slane %v377_v35, 2  ;;  %144 = vmatmul.mubr.f32.vlgmr.msra.gmra.mxu0 %v66_v27  ;;  %v371_v47 = vadd.f32 %v370_v39, %v366_v31  ;;  %v383_v48 = vadd.f32 %v382_v40, %v368_v32  ;;  %p555_p13 = por %p554_p12, %p553_p11 }
  0x27   :  { %v430_v45 = vadd.f32 %v429_v37, %v428_v29  ;;  %v422_v46 = vrot.slane %v421_v38, 2  ;;  %214 = vmatmul.mubr.f32.vlgmr.msra.gmra.mxu1 %v68_v28  ;;  %254 = vmatpush1.xpose.msra.mxu0 %v644_v6  ;;  %v390_v51 = vrot.slane %v389_v44, 2  ;;  %v444_v52 = vadd.f32 %v443_v41, %v442_v33 }
  0x28   :  { %v436_v49 = vrot.slane %v435_v42, 2  ;;  %v379_v50 = vadd.f32 %v378_v43, %v377_v35  ;;  %324 = vmatpush1.xpose.msra.mxu1 %v647_v10  ;;  %287 = vmatprep.mubr.f32.mxu0 %v639_v0  ;;  %v372_v55 = vrot.slane %v371_v47, 2  ;;  %v384_v56 = vrot.slane %v383_v48, 2  ;;  %p556_p0 = pnand %p555_p13, %p549_p10 }
  0x29   :  { %v431_v53 = vrot.slane %v430_v45, 1  ;;  %v423_v54 = vadd.f32 %v422_v46, %v421_v38  ;;  %357 = vmatprep.mubr.f32.mxu1 %v641_v2  ;;  %v391_v59 = vadd.f32 %v390_v51, %v389_v44  ;;  %v445_v60 = vrot.slane %v444_v52, 1 }
  0x2a   :  { %v437_v57 = vadd.f32 %v436_v49, %v435_v42  ;;  %v380_v58 = vrot.slane %v379_v50, 1  ;;  %288 = vmatmul.mubr.f32.vlgmr.msra.gmra.mxu0 %v644_v6  ;;  %v373_v62 = vadd.f32 %v372_v55, %v371_v47  ;;  %v385_v63 = vadd.f32 %v384_v56, %v383_v48 }
  0x2b   :  { %v424_v61 = vrot.slane %v423_v54, 1  ;;  %358 = vmatmul.mubr.f32.vlgmr.msra.gmra.mxu1 %v647_v10  ;;  %v432_v1 = vadd.f32 %v431_v53, %v430_v45  ;;  %v392_v3 = vrot.slane %v391_v59, 1  ;;  %v446_v13 = vadd.f32 %v445_v60, %v444_v52 }
  0x2c   :  { %v381_v0 = vadd.f32 %v380_v58, %v379_v50  ;;  %v438_v4 = vrot.slane %v437_v57, 1  ;;  %v374_v5 = vrot.slane %v373_v62, 1  ;;  %v386_v7 = vrot.slane %v385_v63, 1 }
  0x2d   :  { %v425_v8 = vadd.f32 %v424_v61, %v423_v54  ;;  %v448_v9 = vmul.f32 0.0625, %v432_v1  ;;  %v393_v2 = vadd.f32 %v392_v3, %v391_v59  ;;  %v450_v22 = vmul.f32 0.0625, %v446_v13 }
  0x2e   :  { %v395_v11 = vmul.f32 0.125, %v381_v0  ;;  %v439_v12 = vadd.f32 %v438_v4, %v437_v57  ;;  %v375_v6 = vadd.f32 %v374_v5, %v373_v62  ;;  %v387_v14 = vadd.f32 %v386_v7, %v385_v63 }
  0x2f   :  { %v447_v15 = vmul.f32 0.0625, %v425_v8  ;;  %v453_v16 = vmul.f32 %v448_v9, %v448_v9  ;;  %v397_v17 = vmul.f32 0.125, %v393_v2  ;;  %v455_v30 = vmul.f32 %v450_v22, %v450_v22 }
  0x30   :  { %v449_v18 = vmul.f32 0.0625, %v439_v12  ;;  %v394_v19 = vmul.f32 0.125, %v375_v6  ;;  %v396_v10 = vmul.f32 0.125, %v387_v14  ;;  %v400_v20 = vmul.f32 %v395_v11, %v395_v11 }
  0x31   :  { %v452_v21 = vmul.f32 %v447_v15, %v447_v15  ;;  %v402_v27 = vmul.f32 %v397_v17, %v397_v17  ;;  %v600_v34 = vmov 0.0  }
  0x32   :  { %v399_v23 = vmul.f32 %v394_v19, %v394_v19  ;;  %v401_v24 = vmul.f32 %v396_v10, %v396_v10  ;;  %v454_v25 = vmul.f32 %v449_v18, %v449_v18  ;;  %64 = vst.msk [vmem:[#allocation7] sm:$0x1] %vm63_vm0, %v600_v34  ;;  %65 = vst.msk [vmem:[#allocation8] sm:$0x1] %vm63_vm0, %v600_v34 }
  0x33   :  { %v456_v26 = vadd.f32 %v453_v16, %v452_v21  ;;  %60 = vst.msk [vmem:[%s697_s2] sm:$0xff] %vm59_vm1, %v600_v34 }
  0x34   :  { %v403_v28 = vadd.f32 %v400_v20, %v399_v23  ;;  %62 = vst.msk [vmem:[%s698_s3] sm:$0xff] %vm61_vm2, %v600_v34 }
  0x35   :  { %v457_v31 = vadd.f32 %v456_v26, %v454_v25 }
  0x36   :  { %v404_v29 = vadd.f32 %v403_v28, %v401_v24 }
  0x37   :  { %v458_v33 = vadd.f32 %v457_v31, %v455_v30 }
  0x38   :  { %v405_v32 = vadd.f32 %v404_v29, %v402_v27 }
  0x39   :  { %v398_v35 = vld [vmem:[#allocation7] sm:$0x1]  ;;  %v451_v38 = vld [vmem:[#allocation8] sm:$0x1] }
  0x3a   :  { %406 = vadd.xlane.f32.xlu0 %v405_v32 }
  0x3e   :  { %459 = vadd.xlane.f32.xlu0 %v458_v33 }
  0xc3   :  { %v407_v36 = vpop.xlane.xlu0 %406 }
  0xc4   :  { %v408_v37 = vadd.f32 %v407_v36, %v398_v35 }
  0xc6   :  { %410 = vst.msk [vmem:[#allocation7] sm:$0x1] %vm63_vm0, %v408_v37 }
  0xc7   :  { %v460_v39 = vpop.xlane.xlu0 %459 }
  0xc8   :  { %559 = shalt.err (!%p556_p0)
}
  0xc9   :  { %476 = dma.vmem_to_hbm [thread:$0]  %s474_s8, 16, %s699_s4, [#allocation4]   ;;  %v461_v40 = vadd.f32 %v460_v39, %v451_v38 }
  0xca   :  { %s568_s15 = scalar_lea.vmem %s484_s10, 16  ;;  %s572_s16 = scalar_lea.vmem %s484_s10, 32 }
  0xcb   :  { %462 = vst.msk [vmem:[#allocation8] sm:$0x1] %vm63_vm0, %v461_v40  ;;  %p569_p1 = scmp.ne.s32.totalorder %s484_s10, %s568_s15  ;;  %p573_p2 = scmp.lt.s32.totalorder %s484_s10, %s484_s10 }
  0xcc   :  { %p574_p3 = scmp.lt.s32.totalorder %s572_s16, %s568_s15 }
  0xce   :  { %p575_p4 = por %p574_p3, %p573_p2 }
  0xd0   :  { %p576_p5 = pnand %p575_p4, %p569_p1 }
  0xd2   :  { %579 = shalt.err (!%p576_p5)
}
  0xd3   :  { %486 = dma.vmem_to_hbm [thread:$0]  %s484_s10, 16, %s700_s5, [#allocation9]   ;;  %v78_v42 = vld [vmem:[%s697_s2] sm:$0xff] }
  0xd4   :  { %v222_v49 = vld [vmem:[%s698_s3] sm:$0xff] }
  0xe6   :  { %v145_v41 = vpop.f32.mrf.mxu0 }
  0xe7   :  { %v215_v43 = vpop.f32.mrf.mxu1 }
  0xe8   :  { %v216_v44 = vadd.f32 %v215_v43, %v145_v41  ;;  %v147_v45 = vpop.f32.mrf.mxu0 }
  0xe9   :  { %v217_v46 = vpop.f32.mrf.mxu1 }
  0xea   :  { %v219_v47 = vadd.f32 %v216_v44, %v78_v42  ;;  %v289_v48 = vpop.f32.mrf.mxu0 }
  0xeb   :  { %v359_v50 = vpop.f32.mrf.mxu1 }
  0xec   :  { %221 = vst.msk [vmem:[%s697_s2] sm:$0xff] %vm59_vm1, %v219_v47  ;;  %v360_v51 = vadd.f32 %v359_v50, %v289_v48  ;;  %v291_v52 = vpop.f32.mrf.mxu0 }
  0xed   :  { %v361_v53 = vpop.f32.mrf.mxu1 }
  0xee   :  { %v363_v54 = vadd.f32 %v360_v51, %v222_v49 }
  0xf0   :  { %365 = vst.msk [vmem:[%s698_s3] sm:$0xff] %vm61_vm2, %v363_v54 }
  0xf1   :  { %592 = dma.done.wait [#allocation4], 16  }
  0xf2   :  { %593 = vsyncadd [#allocation4], 4294967280 }
  0xf3   :  { %594 = dma.done.wait [#allocation9], 16  }
  0xf4   :  { %595 = vsyncadd [#allocation9], 4294967280 }
  0xf5   :  { %497 = vsyncpa [#allocation3], 1 }
  0xf6   :  { %498 = vsyncpa [#allocation6], 1 }
  0xf7   :  { %499 = vsyncpa [#allocation4], 1 }
  0xf8   :  { %500 = vsyncpa [#allocation9], 1 }

</bundles_post_ra>
